<compile_context>
chip_gen: v7x
topology: tpu7x:2x2x1
jax: 0.10.0
libtpu: 0.0.40
codegen_flags: <defaults>
</compile_context>

<pallas_src>
import jax
import jax.numpy as jnp
from jax.experimental import pallas as pl
from jax.experimental.pallas import tpu as pltpu

IN_DIM = 28 * 28        # 784
H1 = 128
H2 = 64
H2P = 128               # H2 zero-padded to a full lane width
NUM_CLASSES = 10
PAD_CLASSES = 128       # lane-dense padded class dimension
MAX_TILE_B = 2048       # batch-tile cap (x f32 double-buffer ~12 MiB, fits all gens)


def mlp_kernel(x_ref, w1_ref, b1_ref, w2_ref, b2_ref, w3_ref, b3_ref,
               mask_ref, o_ref):
    # x arrives as f32 (no wrapper cast / extra HBM pass); cast to bf16 right
    # before the MXU, accumulate in f32 via preferred_element_type.
    x = x_ref[...].astype(jnp.bfloat16)

    # Layer 1: (tile_b, 784) @ (784, 128) -> f32, +bias, ReLU
    h1 = jnp.dot(x, w1_ref[...], preferred_element_type=jnp.float32)
    h1 = jnp.maximum(h1 + b1_ref[...], 0.0)

    # Layer 2: (tile_b, 128) @ (128, 128-padded) -> f32, +bias, ReLU
    h2 = jnp.dot(h1.astype(jnp.bfloat16), w2_ref[...],
                 preferred_element_type=jnp.float32)
    h2 = jnp.maximum(h2 + b2_ref[...], 0.0)

    # Layer 3: (tile_b, 128) @ (128, 128-padded) -> f32, +bias, ReLU
    # (the PyTorch model applies ReLU here too)
    logits = jnp.dot(h2.astype(jnp.bfloat16), w3_ref[...],
                     preferred_element_type=jnp.float32)
    logits = jnp.maximum(logits + b3_ref[...], 0.0)

    # Additive mask (0 for real classes, -1e30 for padded ones), applied AFTER
    # the ReLU so padded columns vanish from the log-sum-exp.
    logits = logits + mask_ref[...]

    # Numerically stable log_softmax over the class axis.
    m = jnp.max(logits, axis=-1, keepdims=True)
    z = logits - m
    lse = jnp.log(jnp.sum(jnp.exp(z), axis=-1, keepdims=True))
    o_ref[...] = (z - lse).astype(o_ref.dtype)


def _round_up(n, m):
    return ((n + m - 1) // m) * m


@jax.jit
def modelo_forward_padded(x, w1, b1, w2, b2, w3, b3):
    """Runs the MLP and returns the padded (b_pad, 128) bf16 log-prob buffer.

    Rows >= x.shape[0] and columns >= NUM_CLASSES are padding. Consumers that
    can reduce over the 10 real classes directly (argmax / NLL) should use this
    to avoid the extra HBM pass of a slice.
    """
    B = x.shape[0]
    x = x.astype(jnp.float32)   # no-op for f32 callers; bf16 cast happens in-kernel

    # Weight prep (tiny, one-time): bf16 MXU operands, f32 biases, H2 padded
    # 64->128 and classes 10->128 so all matmul dims and the store are
    # 128-lane-dense. Padded w2 cols / b2 entries are zero -> padded h2 cols
    # are ReLU(0)=0; padded w3 rows are zero -> they contribute nothing.
    w1b = w1.astype(jnp.bfloat16)
    w2p = jnp.zeros((H1, H2P), jnp.bfloat16).at[:, :H2].set(w2.astype(jnp.bfloat16))
    w3p = jnp.zeros((H2P, PAD_CLASSES), jnp.bfloat16).at[:H2, :NUM_CLASSES].set(
        w3.astype(jnp.bfloat16))
    b1f = b1.astype(jnp.float32).reshape(1, H1)
    b2p = jnp.zeros((1, H2P), jnp.float32).at[:, :H2].set(
        b2.astype(jnp.float32).reshape(1, H2))
    b3p = jnp.zeros((1, PAD_CLASSES), jnp.float32).at[:, :NUM_CLASSES].set(
        b3.astype(jnp.float32).reshape(1, NUM_CLASSES))
    mask = jnp.where(jnp.arange(PAD_CLASSES) < NUM_CLASSES,
                     jnp.float32(0.0), jnp.float32(-1e30)).reshape(1, PAD_CLASSES)

    # Adaptive batch tile: cap at MAX_TILE_B for big batches; otherwise size
    # for exactly 2 grid steps (feeds both v7x TensorCores through the
    # "parallel" axis) with minimal batch padding (sublane-aligned to 8).
    if B >= 2 * MAX_TILE_B:
        tile_b = MAX_TILE_B
    else:
        tile_b = max(8, _round_up(pl.cdiv(B, 2), 8))
    b_pad = _round_up(B, tile_b)
    if b_pad != B:
        x = jnp.pad(x, ((0, b_pad - B), (0, 0)))

    const = lambda i: (0, 0)  # weights/biases/mask: VMEM-resident across steps

    out = pl.pallas_call(
        mlp_kernel,
        out_shape=jax.ShapeDtypeStruct((b_pad, PAD_CLASSES), jnp.bfloat16),
        grid_spec=pltpu.PrefetchScalarGridSpec(
            num_scalar_prefetch=0,
            grid=(b_pad // tile_b,),
            in_specs=[
                pl.BlockSpec((tile_b, IN_DIM), lambda i: (i, 0)),  # x: streamed f32
                pl.BlockSpec((IN_DIM, H1), const),
                pl.BlockSpec((1, H1), const),
                pl.BlockSpec((H1, H2P), const),
                pl.BlockSpec((1, H2P), const),
                pl.BlockSpec((H2P, PAD_CLASSES), const),
                pl.BlockSpec((1, PAD_CLASSES), const),
                pl.BlockSpec((1, PAD_CLASSES), const),              # class mask
            ],
            out_specs=pl.BlockSpec((tile_b, PAD_CLASSES), lambda i: (i, 0)),
        ),
        compiler_params=pltpu.CompilerParams(
            dimension_semantics=("parallel",),     # dual-TC sharding on v7x
            vmem_limit_bytes=64 * 1024 * 1024,     # f32 x double-buffer > v5e default
        ),
    )(x, w1b, b1f, w2p, b2p, w3p, b3p, mask)
    return out


def modelo_forward(x, w1, b1, w2, b2, w3, b3):
    # Exact PyTorch-module semantics: (B, 10) log-probs. The slice costs one
    # extra output-stream pass; perf-critical consumers should use
    # modelo_forward_padded directly.
    out = modelo_forward_padded(x, w1, b1, w2, b2, w3, b3)
    return out[:x.shape[0], :NUM_CLASSES]


def init_params(key):
    # PyTorch-style nn.Linear init: U(-1/sqrt(fan_in), 1/sqrt(fan_in))
    k = jax.random.split(key, 6)

    def lin(kw, kb, fan_in, fan_out):
        bound = 1.0 / jnp.sqrt(fan_in)
        w = jax.random.uniform(kw, (fan_in, fan_out), jnp.float32, -bound, bound)
        b = jax.random.uniform(kb, (fan_out,), jnp.float32, -bound, bound)
        return w, b

    w1, b1 = lin(k[0], k[1], IN_DIM, H1)
    w2, b2 = lin(k[2], k[3], H1, H2)
    w3, b3 = lin(k[4], k[5], H2, NUM_CLASSES)
    return w1, b1, w2, b2, w3, b3


if __name__ == "__main__":
    key = jax.random.PRNGKey(0)
    kx, kp = jax.random.split(key)

    B = 32  # small demo batch -> tile_b=16, 2 grid steps (exercises pipelining)
    x = jax.random.normal(kx, (B, IN_DIM), jnp.float32)
    w1, b1, w2, b2, w3, b3 = init_params(kp)

    out = modelo_forward(x, w1, b1, w2, b2, w3, b3)
    jax.block_until_ready(out)

    # Pure-f32 JAX reference (kernel uses bf16 matmul operands and bf16 output
    # -> modest tolerance).
    h1 = jnp.maximum(x @ w1 + b1, 0.0)
    h2 = jnp.maximum(h1 @ w2 + b2, 0.0)
    lg = jnp.maximum(h2 @ w3 + b3, 0.0)
    ref = jax.nn.log_softmax(lg, axis=1)

    assert out.shape == (B, NUM_CLASSES)
    assert jnp.allclose(out.astype(jnp.float32), ref, atol=7.5e-2), \
        "mismatch vs reference"

    print("KERNEL_OK")
</pallas_src>

<mosaic_0001>
module attributes {stable_mosaic.version = 11 : i64} {
  func.func @mlp_kernel(%arg0: i32, %arg1: memref<16x784xf32, #tpu.memory_space<vmem>>, %arg2: memref<784x128xbf16, #tpu.memory_space<vmem>>, %arg3: memref<1x128xf32, #tpu.memory_space<vmem>>, %arg4: memref<128x128xbf16, #tpu.memory_space<vmem>>, %arg5: memref<1x128xf32, #tpu.memory_space<vmem>>, %arg6: memref<128x128xbf16, #tpu.memory_space<vmem>>, %arg7: memref<1x128xf32, #tpu.memory_space<vmem>>, %arg8: memref<1x128xf32, #tpu.memory_space<vmem>>, %arg9: memref<16x128xbf16, #tpu.memory_space<vmem>>) attributes {dimension_semantics = [#tpu.dimension_semantics<parallel>], iteration_bounds = array<i64: 2>, scalar_prefetch = 0 : i64, scratch_operands = 0 : i64, tpu.core_type = #tpu.core_type<tc>, window_params = [{transform_indices = @transform_0, window_bounds = array<i64: 16, 784>}, {pipeline_mode = #tpu.pipeline_mode<synchronous>, transform_indices = @transform_1, window_bounds = array<i64: 784, 128>}, {pipeline_mode = #tpu.pipeline_mode<synchronous>, transform_indices = @transform_2, window_bounds = array<i64: 1, 128>}, {pipeline_mode = #tpu.pipeline_mode<synchronous>, transform_indices = @transform_3, window_bounds = array<i64: 128, 128>}, {pipeline_mode = #tpu.pipeline_mode<synchronous>, transform_indices = @transform_4, window_bounds = array<i64: 1, 128>}, {pipeline_mode = #tpu.pipeline_mode<synchronous>, transform_indices = @transform_5, window_bounds = array<i64: 128, 128>}, {pipeline_mode = #tpu.pipeline_mode<synchronous>, transform_indices = @transform_6, window_bounds = array<i64: 1, 128>}, {pipeline_mode = #tpu.pipeline_mode<synchronous>, transform_indices = @transform_7, window_bounds = array<i64: 1, 128>}, {transform_indices = @transform_8, window_bounds = array<i64: 16, 128>}]} {
    %c0 = arith.constant 0 : index
    %c0_0 = arith.constant 0 : index
    %0 = vector.load %arg1[%c0, %c0_0] : memref<16x784xf32, #tpu.memory_space<vmem>>, vector<16x784xf32>
    %1 = arith.truncf %0 : vector<16x784xf32> to vector<16x784xbf16>
    %c0_1 = arith.constant 0 : index
    %c0_2 = arith.constant 0 : index
    %2 = vector.load %arg2[%c0_1, %c0_2] : memref<784x128xbf16, #tpu.memory_space<vmem>>, vector<784x128xbf16>
    %cst = arith.constant dense<0.000000e+00> : vector<16x128xf32>
    %3 = tpu.matmul %1, %2, %cst {dimension_numbers = #tpu.dot_dimension_numbers<[1], [0], [0], [1], [0, 0, 1, 1], [], []>} : vector<16x784xbf16>, vector<784x128xbf16>, vector<16x128xf32> -> vector<16x128xf32>
    %c0_3 = arith.constant 0 : index
    %c0_4 = arith.constant 0 : index
    %4 = vector.load %arg3[%c0_3, %c0_4] : memref<1x128xf32, #tpu.memory_space<vmem>>, vector<1x128xf32>
    %5 = vector.broadcast %4 : vector<1x128xf32> to vector<16x128xf32>
    %6 = arith.addf %3, %5 : vector<16x128xf32>
    %cst_5 = arith.constant 0.000000e+00 : f32
    %7 = vector.broadcast %cst_5 : f32 to vector<16x128xf32>
    %8 = arith.maximumf %6, %7 : vector<16x128xf32>
    %9 = arith.truncf %8 : vector<16x128xf32> to vector<16x128xbf16>
    %c0_6 = arith.constant 0 : index
    %c0_7 = arith.constant 0 : index
    %10 = vector.load %arg4[%c0_6, %c0_7] : memref<128x128xbf16, #tpu.memory_space<vmem>>, vector<128x128xbf16>
    %cst_8 = arith.constant dense<0.000000e+00> : vector<16x128xf32>
    %11 = tpu.matmul %9, %10, %cst_8 {dimension_numbers = #tpu.dot_dimension_numbers<[1], [0], [0], [1], [0, 0, 1, 1], [], []>} : vector<16x128xbf16>, vector<128x128xbf16>, vector<16x128xf32> -> vector<16x128xf32>
    %c0_9 = arith.constant 0 : index
    %c0_10 = arith.constant 0 : index
    %12 = vector.load %arg5[%c0_9, %c0_10] : memref<1x128xf32, #tpu.memory_space<vmem>>, vector<1x128xf32>
    %13 = vector.broadcast %12 : vector<1x128xf32> to vector<16x128xf32>
    %14 = arith.addf %11, %13 : vector<16x128xf32>
    %cst_11 = arith.constant 0.000000e+00 : f32
    %15 = vector.broadcast %cst_11 : f32 to vector<16x128xf32>
    %16 = arith.maximumf %14, %15 : vector<16x128xf32>
    %17 = arith.truncf %16 : vector<16x128xf32> to vector<16x128xbf16>
    %c0_12 = arith.constant 0 : index
    %c0_13 = arith.constant 0 : index
    %18 = vector.load %arg6[%c0_12, %c0_13] : memref<128x128xbf16, #tpu.memory_space<vmem>>, vector<128x128xbf16>
    %cst_14 = arith.constant dense<0.000000e+00> : vector<16x128xf32>
    %19 = tpu.matmul %17, %18, %cst_14 {dimension_numbers = #tpu.dot_dimension_numbers<[1], [0], [0], [1], [0, 0, 1, 1], [], []>} : vector<16x128xbf16>, vector<128x128xbf16>, vector<16x128xf32> -> vector<16x128xf32>
    %c0_15 = arith.constant 0 : index
    %c0_16 = arith.constant 0 : index
    %20 = vector.load %arg7[%c0_15, %c0_16] : memref<1x128xf32, #tpu.memory_space<vmem>>, vector<1x128xf32>
    %21 = vector.broadcast %20 : vector<1x128xf32> to vector<16x128xf32>
    %22 = arith.addf %19, %21 : vector<16x128xf32>
    %cst_17 = arith.constant 0.000000e+00 : f32
    %23 = vector.broadcast %cst_17 : f32 to vector<16x128xf32>
    %24 = arith.maximumf %22, %23 : vector<16x128xf32>
    %c0_18 = arith.constant 0 : index
    %c0_19 = arith.constant 0 : index
    %25 = vector.load %arg8[%c0_18, %c0_19] : memref<1x128xf32, #tpu.memory_space<vmem>>, vector<1x128xf32>
    %26 = vector.broadcast %25 : vector<1x128xf32> to vector<16x128xf32>
    %27 = arith.addf %24, %26 : vector<16x128xf32>
    %cst_20 = arith.constant dense<0xFF800000> : vector<16xf32>
    %28 = vector.multi_reduction <maximumf>, %27, %cst_20 [1] : vector<16x128xf32> to vector<16xf32>
    %29 = vector.shape_cast %28 : vector<16xf32> to vector<16x1xf32>
    %30 = vector.broadcast %29 : vector<16x1xf32> to vector<16x128xf32>
    %31 = arith.subf %27, %30 : vector<16x128xf32>
    %32 = math.exp %31 : vector<16x128xf32>
    %cst_21 = arith.constant dense<0.000000e+00> : vector<16xf32>
    %33 = vector.multi_reduction <add>, %32, %cst_21 [1] : vector<16x128xf32> to vector<16xf32>
    %34 = vector.shape_cast %33 : vector<16xf32> to vector<16x1xf32>
    %35 = math.log %34 : vector<16x1xf32>
    %36 = vector.broadcast %35 : vector<16x1xf32> to vector<16x128xf32>
    %37 = arith.subf %31, %36 : vector<16x128xf32>
    %38 = arith.truncf %37 : vector<16x128xf32> to vector<16x128xbf16>
    %c0_22 = arith.constant 0 : index
    %c0_23 = arith.constant 0 : index
    %39 = vector.load %arg9[%c0_22, %c0_23] : memref<16x128xbf16, #tpu.memory_space<vmem>>, vector<16x128xbf16>
    tpu.vector_store %arg9[%c0_22, %c0_23], %38 {strides = array<i32>} : memref<16x128xbf16, #tpu.memory_space<vmem>>, vector<16x128xbf16>,
    return
  }
  func.func @transform_0(%arg0: i32) -> (i32, i32) {
    %c0_i32 = arith.constant 0 : i32
    %c0_i32_0 = arith.constant 0 : i32
    return %arg0, %c0_i32 : i32, i32
  }
  func.func @transform_1(%arg0: i32) -> (i32, i32) {
    %c0_i32 = arith.constant 0 : i32
    %c0_i32_0 = arith.constant 0 : i32
    %c0_i32_1 = arith.constant 0 : i32
    return %c0_i32, %c0_i32_0 : i32, i32
  }
  func.func @transform_2(%arg0: i32) -> (i32, i32) {
    %c0_i32 = arith.constant 0 : i32
    %c0_i32_0 = arith.constant 0 : i32
    %c0_i32_1 = arith.constant 0 : i32
    return %c0_i32, %c0_i32_0 : i32, i32
  }
  func.func @transform_3(%arg0: i32) -> (i32, i32) {
    %c0_i32 = arith.constant 0 : i32
    %c0_i32_0 = arith.constant 0 : i32
    %c0_i32_1 = arith.constant 0 : i32
    return %c0_i32, %c0_i32_0 : i32, i32
  }
  func.func @transform_4(%arg0: i32) -> (i32, i32) {
    %c0_i32 = arith.constant 0 : i32
    %c0_i32_0 = arith.constant 0 : i32
    %c0_i32_1 = arith.constant 0 : i32
    return %c0_i32, %c0_i32_0 : i32, i32
  }
  func.func @transform_5(%arg0: i32) -> (i32, i32) {
    %c0_i32 = arith.constant 0 : i32
    %c0_i32_0 = arith.constant 0 : i32
    %c0_i32_1 = arith.constant 0 : i32
    return %c0_i32, %c0_i32_0 : i32, i32
  }
  func.func @transform_6(%arg0: i32) -> (i32, i32) {
    %c0_i32 = arith.constant 0 : i32
    %c0_i32_0 = arith.constant 0 : i32
    %c0_i32_1 = arith.constant 0 : i32
    return %c0_i32, %c0_i32_0 : i32, i32
  }
  func.func @transform_7(%arg0: i32) -> (i32, i32) {
    %c0_i32 = arith.constant 0 : i32
    %c0_i32_0 = arith.constant 0 : i32
    %c0_i32_1 = arith.constant 0 : i32
    return %c0_i32, %c0_i32_0 : i32, i32
  }
  func.func @transform_8(%arg0: i32) -> (i32, i32) {
    %c0_i32 = arith.constant 0 : i32
    %c0_i32_0 = arith.constant 0 : i32
    return %arg0, %c0_i32 : i32, i32
  }
}

</mosaic_0001>

<bundles_post_ra>
// kernel: modelo_forward_padded.1
= control target key start
LH: loop header
LB: loop body
LE: loop exit
PB: predicated region body
PF: predicated region fallthrough
CT: control target
= control target key end

     0   :  { %s2637_s0 = inlined_call_operand.hbm [shape: f32[32,784], index: 0, kind: input, shape index: {}]   ;;  %s2638_s1 = inlined_call_operand.hbm [shape: bf16[784,128], index: 1, kind: input, shape index: {}]   ;;  %s2639_s2 = inlined_call_operand.hbm [shape: f32[1,128], index: 2, kind: input, shape index: {}]   ;;  %s2640_s3 = inlined_call_operand.hbm [shape: bf16[128,128], index: 3, kind: input, shape index: {}]   ;;  %s2641_s4 = inlined_call_operand.hbm [shape: f32[1,128], index: 4, kind: input, shape index: {}]   ;;  %s2642_s5 = inlined_call_operand.hbm [shape: bf16[128,128], index: 5, kind: input, shape index: {}]   ;;  %s2643_s6 = inlined_call_operand.hbm [shape: f32[1,128], index: 6, kind: input, shape index: {}]   ;;  %s2644_s7 = inlined_call_operand.hbm [shape: f32[1,128], index: 7, kind: input, shape index: {}]   ;;  %s2645_s8 = inlined_call_operand.hbm [shape: bf16[32,128], index: 8, kind: output, shape index: {}]  }
   0x1   :  { %2649 = sst [smem:[#allocation23_spill]] %s2638_s1 }
   0x2   :  { %2650 = sst [smem:[#allocation24_spill]] %s2639_s2 }
   0x3   :  { %13 = vsyncpa [#allocation3], 0 }
   0x4   :  { %15 = vsyncpa [#allocation3 + $0x1], 0 }
   0x5   :  { %16 = vsyncpa [#allocation6], 0 }
   0x6   :  { %17 = vsyncpa [#allocation9], 0 }
   0x7   :  { %18 = vsyncpa [#allocation12], 0 }
   0x8   :  { %19 = vsyncpa [#allocation15], 0 }
   0x9   :  { %20 = vsyncpa [#allocation4], 0 }
   0xa   :  { %22 = vsyncpa [#allocation4 + $0x1], 0  ;;  %s2247_s27 = smov 0   ;;  %s2249_s28 = smov 0  }
   0xb   :  { %s2251_s29 = smov 0   ;;  %s2253_s30 = smov 0  }
   0xc LB: > { %s2185_s9 = smov [#allocation5]   ;;  %s2268_s11 = sadd.s32 4294967295, %s2183_s30   ;;  %s2183_s30 = sphi %s2253_s30, %s2676_s30   ;;  %s2179_s29 = sphi %s2251_s29, %s2675_s29   ;;  %s2175_s28 = sphi %s2249_s28, %s2674_s28   ;;  %s2171_s27 = sphi %s2247_s27, %s2673_s27  }
   0xd   : > { %s244_s10 = sshll.u32 %s2185_s9, 4  ;;  %p1436_p0 = scmp.ge.s32.totalorder %s2183_s30, 1  ;;  %s2273_s10 = int_to_ptr.vmem [resolvable:$true] %s244_s10 }
   0xe   : > { %p2646_p1 = scmp.eq.s32.totalorder %s2268_s11, 0  ;;  %p232_p2 = scmp.lt.s32.totalorder %s2183_s30, 3 }
   0xf   : > { %s2186_s13 = smov [#allocation8]   ;;  %s2187_s16 = smov [#allocation11]  }
  0x10   : > { %p2275_p3 = pnand %p1436_p0, %p232_p2  ;;  %s268_s14 = sshll.u32 %s2186_s13, 4  ;;  %s2288_s14 = int_to_ptr.vmem [resolvable:$true] %s268_s14 }
  0x11   : > { %s292_s17 = sshll.u32 %s2187_s16, 4  ;;  %s2653_s1 = sld [smem:[#allocation23_spill]]  ;;  %s2290_s17 = int_to_ptr.vmem [resolvable:$true] %s292_s17 }
  0x12   : > { %s2651_s12 = scalar_select %p2275_p3, 1, 0 }
  0x13   : > { %p1709_p5 = pneg %p2275_p3 }
  0x15   : > { %p2284_p6 = pnand %p1709_p5, %p2646_p1 }
  0x17   : > { %s1875_s20 = scalar_lea.hbm %s2653_s1, 6272  ;;  %p2300_p8 = pneg %p2284_p6 }
  0x18   : > { %p1876_p7 = scmp.ne.s32.totalorder %s2653_s1, %s1875_s20  ;;  %p1882_p11 = scmp.lt.u32.totalorder %s1875_s20, %s2653_s1 }
  0x1a   : > { %p1878_p9 = pnand %p2300_p8, %p1876_p7 }
  0x1c   : > { %p1879_p10 = pneg %p1878_p9 }
  0x1e   : > { %p1884_p12 = pnand %p1882_p11, %p1879_p10 }
  0x20   : > { %1887 = shalt.err (!%p1884_p12)
}
  0x21   : > { %s1888_s26 = scalar_lea.vmem %s2273_s10, 6272  ;;  %p1896_p5 = scmp.lt.s32.totalorder %s2273_s10, %s2273_s10 }
  0x22   : > { %p1889_p13 = scmp.ne.s32.totalorder %s2273_s10, %s1888_s26  ;;  %p1897_p4 = scmp.lt.s32.totalorder %s1888_s26, %s1888_s26 }
  0x24   : > { %p1891_p0 = pnand %p1889_p13, %p2300_p8  ;;  %p1898_p7 = por %p1897_p4, %p1896_p5 }
  0x26   : > { %p1892_p2 = pneg %p1891_p0 }
  0x28   : > { %p1899_p9 = pnand %p1898_p7, %p1892_p2 }
  0x2a   : > { %1902 = shalt.err (!%p1899_p9)
}
  0x2b   : > { %s2188_s9 = smov 64   ;;  %s2189_s13 = smov 4  }
  0x2c   : > { %1712 = dma.hbm_to_vmem [thread:$0]  (!%p2284_p6), %s2653_s1, 6272, %s2273_s10, [#allocation6], %s2188_s9, %s2188_s9, %s2189_s13  }
  0x2d   : > { %s1903_s21 = scalar_lea.hbm %s2640_s3, 1024 }
  0x2e   : > { %p1904_p4 = scmp.ne.s32.totalorder %s2640_s3, %s1903_s21  ;;  %p1910_p12 = scmp.lt.u32.totalorder %s1903_s21, %s2640_s3 }
  0x30   : > { %p1906_p10 = pnand %p1904_p4, %p2300_p8 }
  0x32   : > { %p1907_p11 = pneg %p1906_p10 }
  0x34   : > { %p1912_p13 = pnand %p1910_p12, %p1907_p11 }
  0x36   : > { %1915 = shalt.err (!%p1912_p13)
}
  0x37   : > { %s1916_s10 = scalar_lea.vmem %s2288_s14, 1024  ;;  %p1924_p7 = scmp.lt.s32.totalorder %s2288_s14, %s2288_s14 }
  0x38   : > { %p1917_p0 = scmp.ne.s32.totalorder %s2288_s14, %s1916_s10  ;;  %p1925_p9 = scmp.lt.s32.totalorder %s1916_s10, %s1916_s10 }
  0x3a   : > { %p1919_p2 = pnand %p1917_p0, %p2300_p8  ;;  %p1926_p4 = por %p1925_p9, %p1924_p7 }
  0x3c   : > { %p1920_p5 = pneg %p1919_p2 }
  0x3e   : > { %p1927_p10 = pnand %p1926_p4, %p1920_p5 }
  0x40   : > { %1930 = shalt.err (!%p1927_p10)
}
  0x41   : > { %1718 = dma.hbm_to_vmem [thread:$0]  (!%p2284_p6), %s2640_s3, 1024, %s2288_s14, [#allocation9], %s2188_s9, %s2188_s9, %s2189_s13  }
  0x42   : > { %s1931_s21 = scalar_lea.hbm %s2642_s5, 1024 }
  0x43   : > { %p1932_p11 = scmp.ne.s32.totalorder %s2642_s5, %s1931_s21  ;;  %p1938_p0 = scmp.lt.u32.totalorder %s1931_s21, %s2642_s5 }
  0x45   : > { %p1934_p12 = pnand %p1932_p11, %p2300_p8 }
  0x47   : > { %p1935_p13 = pneg %p1934_p12 }
  0x49   : > { %p1940_p2 = pnand %p1938_p0, %p1935_p13 }
  0x4b   : > { %1943 = shalt.err (!%p1940_p2)
}
  0x4c   : > { %s1944_s14 = scalar_lea.vmem %s2290_s17, 1024  ;;  %p1952_p4 = scmp.lt.s32.totalorder %s2290_s17, %s2290_s17 }
  0x4d   : > { %p1945_p5 = scmp.ne.s32.totalorder %s2290_s17, %s1944_s14  ;;  %p1953_p10 = scmp.lt.s32.totalorder %s1944_s14, %s1944_s14 }
  0x4f   : > { %p1947_p7 = pnand %p1945_p5, %p2300_p8  ;;  %p1954_p11 = por %p1953_p10, %p1952_p4 }
  0x51   : > { %p1948_p9 = pneg %p1947_p7 }
  0x53   : > { %p1955_p12 = pnand %p1954_p11, %p1948_p9 }
  0x55   : > { %1958 = shalt.err (!%p1955_p12)
}
  0x56   : > { %1724 = dma.hbm_to_vmem [thread:$0]  (!%p2284_p6), %s2642_s5, 1024, %s2290_s17, [#allocation12], %s2188_s9, %s2188_s9, %s2189_s13  }
  0x57   : > { %s2190_s18 = smov [#allocation7]   ;;  %s2191_s20 = smov [#allocation10]  }
  0x58   : > { %s258_s19 = sshll.u32 %s2190_s18, 4  ;;  %s282_s21 = sshll.u32 %s2191_s20, 4  ;;  %s259_s19 = int_to_ptr.vmem [resolvable:$true] %s258_s19  ;;  %s283_s21 = int_to_ptr.vmem [resolvable:$true] %s282_s21 }
  0x59   : > { %s2655_s2 = sld [smem:[#allocation24_spill]] }
  0x5f   : > { %s1959_s25 = scalar_lea.hbm %s2655_s2, 16 }
  0x60   : > { %p1960_p13 = scmp.ne.s32.totalorder %s2655_s2, %s1959_s25  ;;  %p1966_p5 = scmp.lt.u32.totalorder %s1959_s25, %s2655_s2 }
  0x62   : > { %p1962_p0 = pnand %p1960_p13, %p2300_p8 }
  0x64   : > { %p1963_p2 = pneg %p1962_p0 }
  0x66   : > { %p1968_p7 = pnand %p1966_p5, %p1963_p2 }
  0x68   : > { %1971 = shalt.err (!%p1968_p7)
}
  0x69   : > { %s1972_s17 = scalar_lea.vmem %s259_s19, 16  ;;  %s1979_s9 = scalar_lea.vmem %s259_s19, 32 }
  0x6a   : > { %p1973_p9 = scmp.ne.s32.totalorder %s259_s19, %s1972_s17  ;;  %p1980_p11 = scmp.lt.s32.totalorder %s259_s19, %s259_s19 }
  0x6b   : > { %p1981_p12 = scmp.lt.s32.totalorder %s1979_s9, %s1972_s17 }
  0x6c   : > { %p1975_p4 = pnand %p1973_p9, %p2300_p8 }
  0x6d   : > { %p1982_p1 = por %p1981_p12, %p1980_p11 }
  0x6e   : > { %p1976_p10 = pneg %p1975_p4 }
  0x70   : > { %p1983_p3 = pnand %p1982_p1, %p1976_p10 }
  0x72   : > { %1986 = shalt.err (!%p1983_p3)
}
  0x73   : > { %1715 = dma.hbm_to_vmem [thread:$0]  (!%p2284_p6), %s2655_s2, 16, %s259_s19, [#allocation6]  }
  0x74   : > { %s1987_s20 = scalar_lea.hbm %s2641_s4, 16 }
  0x75   : > { %p1988_p13 = scmp.ne.s32.totalorder %s2641_s4, %s1987_s20  ;;  %p1994_p3 = scmp.lt.u32.totalorder %s1987_s20, %s2641_s4 }
  0x77   : > { %p1990_p0 = pnand %p1988_p13, %p2300_p8 }
  0x79   : > { %p1991_p1 = pneg %p1990_p0 }
  0x7b   : > { %p1996_p2 = pnand %p1994_p3, %p1991_p1 }
  0x7d   : > { %1999 = shalt.err (!%p1996_p2)
}
  0x7e   : > { %s2000_s14 = scalar_lea.vmem %s283_s21, 16  ;;  %s2007_s19 = scalar_lea.vmem %s283_s21, 32 }
  0x7f   : > { %p2001_p5 = scmp.ne.s32.totalorder %s283_s21, %s2000_s14  ;;  %p2008_p4 = scmp.lt.s32.totalorder %s283_s21, %s283_s21 }
  0x80   : > { %p2009_p10 = scmp.lt.s32.totalorder %s2007_s19, %s2000_s14 }
  0x81   : > { %p2003_p7 = pnand %p2001_p5, %p2300_p8 }
  0x82   : > { %p2010_p11 = por %p2009_p10, %p2008_p4 }
  0x83   : > { %p2004_p9 = pneg %p2003_p7 }
  0x85   : > { %p2011_p12 = pnand %p2010_p11, %p2004_p9 }
  0x87   : > { %2014 = shalt.err (!%p2011_p12)
}
  0x88   : > { %1721 = dma.hbm_to_vmem [thread:$0]  (!%p2284_p6), %s2641_s4, 16, %s283_s21, [#allocation9]  }
  0x89   : > { %s2192_s9 = smov [#allocation13]   ;;  %s2193_s16 = smov [#allocation14]  }
  0x8a   : > { %s306_s13 = sshll.u32 %s2192_s9, 4  ;;  %s317_s1 = sshll.u32 %s2193_s16, 4  ;;  %s307_s13 = int_to_ptr.vmem [resolvable:$true] %s306_s13  ;;  %s318_s1 = int_to_ptr.vmem [resolvable:$true] %s317_s1 }
  0x8b   : > { %s2015_s22 = scalar_lea.hbm %s2643_s6, 16 }
  0x8c   : > { %p2016_p13 = scmp.ne.s32.totalorder %s2643_s6, %s2015_s22  ;;  %p2022_p3 = scmp.lt.u32.totalorder %s2015_s22, %s2643_s6 }
  0x8e   : > { %p2018_p0 = pnand %p2016_p13, %p2300_p8 }
  0x90   : > { %p2019_p1 = pneg %p2018_p0 }
  0x92   : > { %p2024_p2 = pnand %p2022_p3, %p2019_p1 }
  0x94   : > { %2027 = shalt.err (!%p2024_p2)
}
  0x95   : > { %s2028_s21 = scalar_lea.vmem %s307_s13, 16  ;;  %s2035_s19 = scalar_lea.vmem %s307_s13, 32 }
  0x96   : > { %p2029_p5 = scmp.ne.s32.totalorder %s307_s13, %s2028_s21  ;;  %p2036_p4 = scmp.lt.s32.totalorder %s307_s13, %s307_s13 }
  0x97   : > { %p2037_p10 = scmp.lt.s32.totalorder %s2035_s19, %s2028_s21 }
  0x98   : > { %p2031_p7 = pnand %p2029_p5, %p2300_p8 }
  0x99   : > { %p2038_p11 = por %p2037_p10, %p2036_p4 }
  0x9a   : > { %p2032_p9 = pneg %p2031_p7 }
  0x9c   : > { %p2039_p12 = pnand %p2038_p11, %p2032_p9 }
  0x9e   : > { %2042 = shalt.err (!%p2039_p12)
}
  0x9f   : > { %1727 = dma.hbm_to_vmem [thread:$0]  (!%p2284_p6), %s2643_s6, 16, %s307_s13, [#allocation12]  }
  0xa0   : > { %s2043_s18 = scalar_lea.hbm %s2644_s7, 16 }
  0xa1   : > { %p2044_p13 = scmp.ne.s32.totalorder %s2644_s7, %s2043_s18  ;;  %p2050_p3 = scmp.lt.u32.totalorder %s2043_s18, %s2644_s7 }
  0xa3   : > { %p2046_p0 = pnand %p2044_p13, %p2300_p8 }
  0xa5   : > { %p2047_p1 = pneg %p2046_p0 }
  0xa7   : > { %p2052_p2 = pnand %p2050_p3, %p2047_p1 }
  0xa9   : > { %2055 = shalt.err (!%p2052_p2)
}
  0xaa   : > { %s2056_s26 = scalar_lea.vmem %s318_s1, 16  ;;  %s2063_s13 = scalar_lea.vmem %s318_s1, 32 }
  0xab   : > { %p2057_p5 = scmp.ne.s32.totalorder %s318_s1, %s2056_s26  ;;  %p2064_p4 = scmp.lt.s32.totalorder %s318_s1, %s318_s1 }
  0xac   : > { %p2065_p10 = scmp.lt.s32.totalorder %s2063_s13, %s2056_s26 }
  0xad   : > { %p2059_p7 = pnand %p2057_p5, %p2300_p8 }
  0xae   : > { %p2066_p11 = por %p2065_p10, %p2064_p4 }
  0xaf   : > { %p2060_p9 = pneg %p2059_p7 }
  0xb1   : > { %p2067_p12 = pnand %p2066_p11, %p2060_p9 }
  0xb3   : > { %2070 = shalt.err (!%p2067_p12)
}
  0xb4   : > { %1730 = dma.hbm_to_vmem [thread:$0]  (!%p2284_p6), %s2644_s7, 16, %s318_s1, [#allocation15]  }
  0xb5   : > { %s1435_s23 = sadd.s32 4294967294, %s2183_s30   ;;  %s2450_s15 = sadd.s32 1, %s2183_s30  }
  0xb6   : > { %s35_s19 = sadd.s32 1, %s2179_s29  ;;  %s32_s10 = ssub.s32 %s2183_s30, %s2450_s15 }
  0xb7   : > { %p42_p8 = scmp.ne.s32.totalorder %s2179_s29, %s2175_s28  ;;  %p33_p13 = scmp.eq.s32.totalorder %s32_s10, 0 }
  0xb8   : > { %p43_p0 = scmp.eq.s32.totalorder %s2183_s30, 0  ;;  %p48_p1 = scmp.ne.s32.totalorder %s2175_s28, %s2171_s27 }
  0xb9   : > { %p219_p3 = scmp.eq.s32.totalorder %s2268_s11, 1  ;;  %p2656_p5 = scmp.eq.s32.totalorder %s2268_s11, 0 }
  0xba   : > { %s2462_s17 = scalar_select %p33_p13, %s2179_s29, %s35_s19  }
  0xbb   : > { %p44_p2 = por %p43_p0, %p42_p8  ;;  %p2466_p7 = por %p2656_p5, %p48_p1 }
  0xbc   : > { %p2470_p6 = por %p219_p3, %p42_p8  ;;  %p225_p9 = scmp.eq.s32.totalorder %s1435_s23, 1 }
  0xbd   : > { %p1746_p4 = scmp.lt.s32.totalorder %s2183_s30, 2  ;;  %s328_s16 = sand.u32 1, %s2179_s29  }
  0xbe   : > { %s2658_s1 = scalar_select %p2470_p6, 1, 0 }
  0xbf   : > { %p2476_p10 = por %p225_p9, %p48_p1  ;;  %s1674_s20 = smul.u32 112, %s328_s16 }
  0xc0   : > { %p2480_p11 = pnand %p1746_p4, %p44_p2  ;;  %s1675_s24 = smul.u32 1792, %s2183_s30 }
  0xc1   : > { %s2659_s18 = scalar_select %p2476_p10, 1, 0 }
  0xc2   : > { %s2488_s13 = scalar_lea.hbm %s2637_s0, %s1675_s24  ;;  %s332_s14 = scalar_lea.vmem [#allocation2], %s1674_s20 }
  0xc3   : > { %s340_s21 = sshll.u32 %s332_s14, 4  ;;  %s2492_s23 = scalar_lea.sflag [#allocation3], %s328_s16  ;;  %s2490_s21 = int_to_ptr.vmem [resolvable:$true] %s340_s21 }
  0xc4   : > { %s2071_s19 = scalar_lea.hbm %s2488_s13, 1792  ;;  %p2073_p8 = pneg %p2480_p11 }
  0xc5   : > { %p2072_p12 = scmp.ne.s32.totalorder %s2488_s13, %s2071_s19  ;;  %s2076_s25 = scalar_lea.hbm %s2637_s0, 3584 }
  0xc6   : > { %p2077_p1 = scmp.lt.u32.totalorder %s2488_s13, %s2637_s0  ;;  %p2078_p3 = scmp.lt.u32.totalorder %s2076_s25, %s2071_s19 }
  0xc7   : > { %p2074_p13 = pnand %p2073_p8, %p2072_p12  ;;  %p2080_p5 = scmp.lt.u32.totalorder %s2071_s19, %s2488_s13 }
  0xc8   : > { %p2079_p2 = por %p2078_p3, %p2077_p1 }
  0xc9   : > { %p2075_p0 = pneg %p2074_p13 }
  0xca   : > { %p2081_p9 = por %p2080_p5, %p2079_p2 }
  0xcc   : > { %p2082_p4 = pnand %p2081_p9, %p2075_p0 }
  0xce   : > { %2085 = shalt.err (!%p2082_p4)
}
  0xcf   : > { %s2086_s16 = scalar_lea.vmem %s2490_s21, 1792  ;;  %s2194_s20 = smov [#allocation2]  }
  0xd0   : > { %p2087_p12 = scmp.ne.s32.totalorder %s2490_s21, %s2086_s16  ;;  %s2091_s14 = sshll.u32 %s2194_s20, 4  ;;  %s2092_s14 = int_to_ptr.vmem [resolvable:$false] %s2091_s14 }
  0xd1   : > { %s2093_s2 = scalar_lea.vmem %s2092_s14, 3584  ;;  %p2094_p6 = scmp.lt.s32.totalorder %s2490_s21, %s2092_s14 }
  0xd2   : > { %p2089_p13 = pnand %p2087_p12, %p2073_p8  ;;  %p2095_p1 = scmp.lt.s32.totalorder %s2093_s2, %s2086_s16 }
  0xd4   : > { %p2090_p10 = pneg %p2089_p13  ;;  %p2096_p3 = por %p2095_p1, %p2094_p6 }
  0xd6   : > { %p2097_p2 = pnand %p2096_p3, %p2090_p10 }
  0xd8   : > { %2100 = shalt.err (!%p2097_p2)
}
  0xd9   : > { %s2195_s19 = smov 896   ;;  %s2196_s10 = smov 56  }
  0xda   : > { %1734 = dma.hbm_to_vmem [thread:$0]  (!%p2480_p11), %s2488_s13, 1792, %s2490_s21, %s2492_s23, %s2195_s19, %s2195_s19, %s2196_s10  }
  0xdb   : > { %p2661_p8 = scmp.ne.s32.totalorder %s2651_s12, 0 }
  0xdc   : > { %s2523_s24 = sand.u32 (!%p2661_p8), 1, %s2175_s28  }
  0xdd   : > { %352 = sbr.rel (%p2661_p8) target bundleno = 1305 (0x519), region = 52  ;;  %s355_s26 = scalar_lea.sflag (!%p2661_p8), [#allocation3], %s2523_s24 }
  0xde   : > { %s1676_s25 = smul.u32 (!%p2661_p8), 112, %s2523_s24 }
  0xe0   : > { %s2527_s16 = scalar_lea.vmem (!%p2661_p8), [#allocation2], %s1676_s25 }
  0xe4   : > { %2146 = dma.done.wait (%p2466_p7), %s355_s26, 1792  }
  0xe5   : > { %2148 = vsyncadd (%p2466_p7), %s355_s26, 4294965504  ;;  %p2662_p6 = scmp.eq.s32.totalorder %s2268_s11, 0 }
  0xe7   : > { %2150 = dma.done.wait (%p2662_p6), [#allocation6], 6288   ;;  %p2663_p10 = pmov %p2662_p6 }
  0xe8   : > { %p2664_p11 = pmov %p2662_p6 }
  0xe9   : > { %2152 = vsyncadd (%p2663_p10), [#allocation6], 4294961008 }
  0xea   : > { %2154 = dma.done.wait (%p2664_p11), [#allocation9], 1040   ;;  %p2665_p0 = pmov %p2662_p6 }
  0xec   : > { %2156 = vsyncadd (%p2665_p0), [#allocation9], 4294966256  ;;  %p2666_p5 = pmov %p2665_p0 }
  0xed   : > { %p2667_p9 = pmov %p2665_p0 }
  0xee   : > { %2158 = dma.done.wait (%p2666_p5), [#allocation12], 1040  }
  0xef   : > { %2160 = vsyncadd (%p2667_p9), [#allocation12], 4294966256  ;;  %p2668_p7 = pmov %p2665_p0 }
  0xf0   : > { %p2669_p4 = pmov %p2665_p0 }
  0xf1   : > { %2162 = dma.done.wait (%p2668_p7), [#allocation15], 16  }
  0xf2   : > { %2164 = vsyncadd (%p2669_p4), [#allocation15], 4294967280  ;;  %v1802_v0 = vld [vmem:[#allocation5 + $0x40] sm:$0xff]   ;;  %v1806_v4 = vld [vmem:[#allocation5 + $0x48] sm:$0xff]   ;;  %v2197_v43 = vmov 0.0   ;;  %vm2198_vm0 = vmmov 0  }
  0xf3   : > { %v1803_v1 = vld [vmem:[#allocation5] sm:$0xff]   ;;  %1542 = vmatprep.subr.bf16.mxu0 %v1802_v0  ;;  %v1807_v5 = vld [vmem:[#allocation5 + $0x8] sm:$0xff]   ;;  %v1810_v8 = vld [vmem:[#allocation5 + $0x50] sm:$0xff]   ;;  %vm842_vm1 = vcmask 130048   ;;  %s1456_s12 = sshll.u32 %s2523_s24, 3  ;;  %s1536_s9 = sshll.u32 %s2268_s11, 7 }
  0xf4   : > { %v1804_v2 = vld [vmem:[#allocation5 + $0xc0] sm:$0xff]   ;;  %1543 = vmatpush3.bf16.msra.mxu0 %v1803_v1  ;;  %v1808_v6 = vld [vmem:[#allocation5 + $0xc8] sm:$0xff]   ;;  %v1811_v9 = vld [vmem:[#allocation5 + $0x10] sm:$0xff]   ;;  %s418_s22 = scalar_lea.vmem [#allocation16], %s1456_s12  ;;  %s2591_s20 = scalar_lea.hbm %s2645_s8, %s1536_s9 }
  0xf5   : > { %v1805_v3 = vld [vmem:[#allocation5 + $0x80] sm:$0xff]   ;;  %1564 = vmatprep.subr.bf16.mxu1 %v1804_v2  ;;  %1544 = vmatprep.subr.bf16.mxu0 %v1806_v4  ;;  %v1809_v7 = vld [vmem:[#allocation5 + $0x88] sm:$0xff]   ;;  %v1812_v10 = vld [vmem:[#allocation5 + $0xd0] sm:$0xff]   ;;  %s1295_s13 = sshll.u32 %s418_s22, 4  ;;  %s1282_s14 = scalar_lea.sflag [#allocation4], %s2523_s24  ;;  %s2593_s13 = int_to_ptr.vmem [resolvable:$true] %s1295_s13 }
  0xf6   : > { %1565 = vmatpush3.bf16.msra.mxu1 %v1805_v3  ;;  %v1813_v11 = vld [vmem:[#allocation5 + $0x90] sm:$0xff]   ;;  %v1814_v12 = vld [vmem:[#allocation5 + $0x58] sm:$0xff]   ;;  %v1818_v16 = vld [vmem:[#allocation5 + $0x60] sm:$0xff]   ;;  %s2101_s2 = scalar_lea.vmem %s2593_s13, 128  ;;  %p2670_p13 = scmp.ne.s32.totalorder %s2658_s1, 0 }
  0xf7   : > { %1566 = vmatprep.subr.bf16.mxu1 %v1808_v6  ;;  %v1815_v13 = vld [vmem:[#allocation5 + $0x18] sm:$0xff]   ;;  %v1819_v17 = vld [vmem:[#allocation5 + $0x20] sm:$0xff]   ;;  %v1822_v20 = vld [vmem:[#allocation5 + $0x68] sm:$0xff]   ;;  %p2102_p12 = scmp.ne.s32.totalorder %s2593_s13, %s2101_s2  ;;  %s2199_s11 = smov [#allocation16]  }
  0xf8   : > { %1545 = vmatpush3.bf16.msra.mxu0 %v1807_v5  ;;  %v1816_v14 = vld [vmem:[#allocation5 + $0xd8] sm:$0xff]   ;;  %v1820_v18 = vld [vmem:[#allocation5 + $0xe0] sm:$0xff]   ;;  %v1823_v21 = vld [vmem:[#allocation5 + $0x28] sm:$0xff]   ;;  %s2105_s19 = sshll.u32 %s2199_s11, 4  ;;  %s2106_s19 = int_to_ptr.vmem [resolvable:$false] %s2105_s19 }
  0xf9   : > { %1546 = vmatprep.subr.bf16.mxu0 %v1810_v8  ;;  %v1817_v15 = vld [vmem:[#allocation5 + $0x98] sm:$0xff]   ;;  %v1821_v19 = vld [vmem:[#allocation5 + $0xa0] sm:$0xff]   ;;  %v1824_v22 = vld [vmem:[#allocation5 + $0xe8] sm:$0xff]   ;;  %p2103_p1 = pnand %p2102_p12, %p2670_p13  ;;  %s2107_s10 = scalar_lea.vmem %s2106_s19, 256 }
  0xfa   : > { %1567 = vmatpush3.bf16.msra.mxu1 %v1809_v7  ;;  %v1825_v23 = vld [vmem:[#allocation5 + $0xa8] sm:$0xff]   ;;  %v1826_v24 = vld [vmem:[#allocation5 + $0x70] sm:$0xff]   ;;  %v1830_v28 = vld [vmem:[#allocation5 + $0x78] sm:$0xff]   ;;  %p2108_p2 = scmp.lt.s32.totalorder %s2593_s13, %s2106_s19  ;;  %p2109_p8 = scmp.lt.s32.totalorder %s2107_s10, %s2101_s2 }
  0xfb   : > { %1568 = vmatprep.subr.bf16.mxu1 %v1812_v10  ;;  %v1827_v25 = vld [vmem:[#allocation5 + $0x30] sm:$0xff]   ;;  %v1831_v29 = vld [vmem:[#allocation5 + $0x38] sm:$0xff]   ;;  %v1834_v38 = vld [vmem:[#allocation5 + $0x140] sm:$0xff]   ;;  %p2104_p3 = pneg %p2103_p1 }
  0xfc   : > { %1547 = vmatpush3.bf16.msra.mxu0 %v1811_v9  ;;  %v1828_v26 = vld [vmem:[#allocation5 + $0xf0] sm:$0xff]   ;;  %v1832_v30 = vld [vmem:[#allocation5 + $0xf8] sm:$0xff]   ;;  %v1835_v42 = vld [vmem:[#allocation5 + $0x100] sm:$0xff]   ;;  %p2110_p6 = por %p2109_p8, %p2108_p2 }
  0xfd   : > { %1548 = vmatprep.subr.bf16.mxu0 %v1814_v12  ;;  %v1829_v27 = vld [vmem:[#allocation5 + $0xb0] sm:$0xff]   ;;  %v423_v31 = vld [vmem:[%s2527_s16 + $0x8] sm:$0xff]  ;;  %v429_v36 = vld [vmem:[%s2527_s16 + $0x38] sm:$0xff] }
  0xfe   : > { %1569 = vmatpush3.bf16.msra.mxu1 %v1813_v11  ;;  %v430_v32 = vld [vmem:[%s2527_s16 + $0x40] sm:$0xff]  ;;  %v1833_v34 = vld [vmem:[#allocation5 + $0xb8] sm:$0xff]   ;;  %v432_v40 = vld [vmem:[%s2527_s16 + $0x50] sm:$0xff]  ;;  %p2111_p10 = pnand %p2110_p6, %p2104_p3 }
  0xff   : > { %1570 = vmatprep.subr.bf16.mxu1 %v1816_v14  ;;  %v437_v33 = vpack.c.bf16 %v430_v32, %v423_v31  ;;  %v422_v35 = vld [vmem:[%s2527_s16] sm:$0xff]  ;;  %v425_v39 = vld [vmem:[%s2527_s16 + $0x18] sm:$0xff]  ;;  %v424_v44 = vld [vmem:[%s2527_s16 + $0x10] sm:$0xff] }
 0x100   : > { %1549 = vmatpush3.bf16.msra.mxu0 %v1815_v13  ;;  %v436_v37 = vpack.c.bf16 %v429_v36, %v422_v35  ;;  %v439_v41 = vpack.c.bf16 %v432_v40, %v425_v39  ;;  %v431_v45 = vld [vmem:[%s2527_s16 + $0x48] sm:$0xff]  ;;  %v1838_v49 = vld [vmem:[#allocation5 + $0x150] sm:$0xff]   ;;  %v1842_v53 = vld [vmem:[#allocation5 + $0x160] sm:$0xff]  }
 0x101   : > { %1550 = vmatprep.subr.bf16.mxu0 %v1818_v16  ;;  %878 = vmatprep.mubr.bf16.mxu0 %v437_v33  ;;  %v438_v46 = vpack.c.bf16 %v431_v45, %v424_v44  ;;  %v1836_v47 = vld [vmem:[#allocation5 + $0x148] sm:$0xff]   ;;  %v1839_v50 = vld [vmem:[#allocation5 + $0x110] sm:$0xff]   ;;  %v1840_v51 = vld [vmem:[#allocation5 + $0x158] sm:$0xff]  }
 0x102   : > { %1571 = vmatpush3.bf16.msra.mxu1 %v1817_v15  ;;  %919 = vmatprep.mubr.bf16.mxu1 %v439_v41  ;;  %v1837_v48 = vld [vmem:[#allocation5 + $0x108] sm:$0xff]   ;;  %v1841_v52 = vld [vmem:[#allocation5 + $0x118] sm:$0xff]   ;;  %v1843_v54 = vld [vmem:[#allocation5 + $0x120] sm:$0xff]  }
 0x103   : > { %1572 = vmatprep.subr.bf16.mxu1 %v1820_v18  ;;  %v1844_v55 = vld [vmem:[#allocation5 + $0x168] sm:$0xff]   ;;  %v1850_v56 = vld [vmem:[#allocation5 + $0x180] sm:$0xff]   ;;  %v1846_v59 = vld [vmem:[#allocation5 + $0x170] sm:$0xff]  }
 0x104   : > { %1551 = vmatpush3.bf16.msra.mxu0 %v1819_v17  ;;  %v427_v57 = vld [vmem:[%s2527_s16 + $0x28] sm:$0xff]  ;;  %v434_v60 = vld [vmem:[%s2527_s16 + $0x60] sm:$0xff]  ;;  %v428_v62 = vld [vmem:[%s2527_s16 + $0x30] sm:$0xff] }
 0x105   : > { %1552 = vmatprep.subr.bf16.mxu0 %v1822_v20  ;;  %v1845_v58 = vld [vmem:[#allocation5 + $0x128] sm:$0xff]   ;;  %v441_v61 = vpack.c.bf16 %v434_v60, %v427_v57  ;;  %v1847_v1 = vld [vmem:[#allocation5 + $0x130] sm:$0xff]   ;;  %v1848_v2 = vld [vmem:[#allocation5 + $0x178] sm:$0xff]  }
 0x106   : > { %1573 = vmatpush3.bf16.msra.mxu1 %v1821_v19  ;;  %v435_v63 = vld [vmem:[%s2527_s16 + $0x68] sm:$0xff]  ;;  %v426_v4 = vld [vmem:[%s2527_s16 + $0x20] sm:$0xff]  ;;  %v433_v5 = vld [vmem:[%s2527_s16 + $0x58] sm:$0xff] }
 0x107   : > { %1574 = vmatprep.subr.bf16.mxu1 %v1824_v22  ;;  %v442_v0 = vpack.c.bf16 %v435_v63, %v428_v62  ;;  %v1849_v3 = vld [vmem:[#allocation5 + $0x138] sm:$0xff]   ;;  %v440_v6 = vpack.c.bf16 %v433_v5, %v426_v4  ;;  %v1851_v7 = vld [vmem:[#allocation8] sm:$0xff]   ;;  %v1854_v10 = vld [vmem:[#allocation8 + $0x18] sm:$0xff]  }
 0x108   : > { %1553 = vmatpush3.bf16.msra.mxu0 %v1823_v21  ;;  %v1852_v8 = vld [vmem:[#allocation8 + $0x8] sm:$0xff]   ;;  %v1853_v9 = vld [vmem:[#allocation8 + $0x10] sm:$0xff]   ;;  %v1855_v11 = vld [vmem:[#allocation8 + $0x20] sm:$0xff]  }
 0x109   : > { %1554 = vmatprep.subr.bf16.mxu0 %v1826_v24  ;;  %v1856_v12 = vld [vmem:[#allocation8 + $0x28] sm:$0xff]   ;;  %v1857_v13 = vld [vmem:[#allocation8 + $0x30] sm:$0xff]   ;;  %v1858_v14 = vld [vmem:[#allocation8 + $0x38] sm:$0xff]  }
 0x10a   : > { %1575 = vmatpush3.bf16.msra.mxu1 %v1825_v23  ;;  %v1859_v15 = vld [vmem:[#allocation11] sm:$0xff]   ;;  %v1860_v16 = vld [vmem:[#allocation11 + $0x8] sm:$0xff]   ;;  %v1861_v17 = vld [vmem:[#allocation11 + $0x10] sm:$0xff]  }
 0x10b   : > { %1576 = vmatprep.subr.bf16.mxu1 %v1828_v26  ;;  %v1862_v18 = vld [vmem:[#allocation11 + $0x18] sm:$0xff]   ;;  %v1863_v19 = vld [vmem:[#allocation11 + $0x20] sm:$0xff]   ;;  %v1864_v20 = vld [vmem:[#allocation11 + $0x28] sm:$0xff]  }
 0x10c   : > { %1555 = vmatpush3.bf16.msra.mxu0 %v1827_v25  ;;  %v1457_v22 = vld [vmem:[#allocation7] ss:$0 sm:$0xff]  ;;  %v1517_v4 = vld [vmem:[#allocation13] ss:$0 sm:$0xff] }
 0x10d   : > { %1556 = vmatprep.subr.bf16.mxu0 %v1830_v28  ;;  %v1866_v57 = vld [vmem:[#allocation11 + $0x38] sm:$0xff]  }
 0x10e   : > { %1577 = vmatpush3.bf16.msra.mxu1 %v1829_v27 }
 0x10f   : > { %1578 = vmatprep.subr.bf16.mxu1 %v1832_v30 }
 0x110   : > { %1557 = vmatpush3.bf16.msra.mxu0 %v1831_v29 }
 0x111   : > { %1586 = vmatprep.subr.bf16.mxu0 %v1834_v38 }
 0x112   : > { %1579 = vmatpush3.bf16.msra.mxu1 %v1833_v34 }
 0x113   : > { %1628 = vmatprep.subr.bf16.mxu1 %v2197_v43  ;;  %879 = vmatmul.mubr.bf16.vlgmr.msra.gmra.mrb[0].mxu0 %v436_v37 }
 0x114   : > { %1587 = vmatpush3.bf16.msra.mxu0 %v1835_v42  ;;  %960 = vmatprep.mubr.bf16.mxu0 %v441_v61 }
 0x115   : > { %920 = vmatmul.mubr.bf16.vlgmr.msra.gmra.mrb[0].mxu1 %v438_v46  ;;  %1588 = vmatprep.subr.bf16.mxu0 %v1836_v47 }
 0x116   : > { %1630 = vmatprep.mubr.msk.bf16.mxu1 %vm2198_vm0, %v2197_v43  ;;  %1629 = vmatpush3.bf16.msra.mxu1 %v1850_v56  ;;  %v1865_v56 = vld [vmem:[#allocation11 + $0x30] sm:$0xff]  }
 0x117   : > { %1634 = vmatprep.subr.bf16.mxu1 %v2197_v43 }
 0x118   : > { %1589 = vmatpush3.bf16.msra.mxu0 %v1837_v48 }
 0x119   : > { %1590 = vmatprep.subr.bf16.mxu0 %v1838_v49 }
 0x11c   : > { %1591 = vmatpush3.bf16.msra.mxu0 %v1839_v50 }
 0x11d   : > { %1592 = vmatprep.subr.bf16.mxu0 %v1840_v51  ;;  %1631 = vmatmul.mubr.msk.bf16.vlgmr.msra.gmra.mrb[4].mxu1 %vm842_vm1, %v442_v0 }
 0x11e   : > { %1650 = vmatprep.mubr.msk.bf16.mxu1 %vm2198_vm0, %v2197_v43  ;;  %1635 = vmatpush3.bf16.msra.mxu1 %v1851_v7 }
 0x11f   : > { %1636 = vmatprep.subr.bf16.mxu1 %v2197_v43 }
 0x120   : > { %1593 = vmatpush3.bf16.msra.mxu0 %v1841_v52 }
 0x121   : > { %1594 = vmatprep.subr.bf16.mxu0 %v1842_v53 }
 0x122   : > { %1637 = vmatpush3.bf16.msra.mxu1 %v1852_v8 }
 0x123   : > { %1638 = vmatprep.subr.bf16.mxu1 %v2197_v43 }
 0x124   : > { %1595 = vmatpush3.bf16.msra.mxu0 %v1843_v54 }
 0x125   : > { %1596 = vmatprep.subr.bf16.mxu0 %v1844_v55 }
 0x126   : > { %1639 = vmatpush3.bf16.msra.mxu1 %v1853_v9  ;;  %v1526_v9 = vld [vmem:[#allocation14] ss:$0 sm:$0xff] }
 0x127   : > { %1640 = vmatprep.subr.bf16.mxu1 %v2197_v43 }
 0x128   : > { %1597 = vmatpush3.bf16.msra.mxu0 %v1845_v58  ;;  %v1508_v58 = vld [vmem:[#allocation10] ss:$0 sm:$0xff] }
 0x129   : > { %1598 = vmatprep.subr.bf16.mxu0 %v1846_v59 }
 0x12a   : > { %1641 = vmatpush3.bf16.msra.mxu1 %v1854_v10 }
 0x12b   : > { %1642 = vmatprep.subr.bf16.mxu1 %v2197_v43 }
 0x12c   : > { %1599 = vmatpush3.bf16.msra.mxu0 %v1847_v1 }
 0x12d   : > { %1600 = vmatprep.subr.bf16.mxu0 %v1848_v2 }
 0x12e   : > { %1643 = vmatpush3.bf16.msra.mxu1 %v1855_v11 }
 0x12f   : > { %1644 = vmatprep.subr.bf16.mxu1 %v2197_v43 }
 0x130   : > { %1601 = vmatpush3.bf16.msra.mxu0 %v1849_v3 }
 0x131   : > { %1654 = vmatprep.subr.bf16.mxu0 %v2197_v43 }
 0x132   : > { %1645 = vmatpush3.bf16.msra.mxu1 %v1856_v12 }
 0x133   : > { %961 = vmatmul.mubr.bf16.vlgmr.msra.gmra.mrb[4].mxu0 %v440_v6  ;;  %1646 = vmatprep.subr.bf16.mxu1 %v2197_v43 }
 0x134   : > { %1670 = vmatprep.mubr.msk.bf16.mxu0 %vm2198_vm0, %v2197_v43  ;;  %1655 = vmatpush3.bf16.msra.mxu0 %v1859_v15 }
 0x135   : > { %1656 = vmatprep.subr.bf16.mxu0 %v2197_v43 }
 0x136   : > { %1647 = vmatpush3.bf16.msra.mxu1 %v1857_v13 }
 0x137   : > { %1648 = vmatprep.subr.bf16.mxu1 %v2197_v43 }
 0x138   : > { %1657 = vmatpush3.bf16.msra.mxu0 %v1860_v16 }
 0x139   : > { %1658 = vmatprep.subr.bf16.mxu0 %v2197_v43 }
 0x13a   : > { %1649 = vmatpush3.bf16.msra.mxu1 %v1858_v14 }
 0x13c   : > { %1659 = vmatpush3.bf16.msra.mxu0 %v1861_v17 }
 0x13d   : > { %1660 = vmatprep.subr.bf16.mxu0 %v2197_v43 }
 0x140   : > { %1661 = vmatpush3.bf16.msra.mxu0 %v1862_v18 }
 0x141   : > { %1662 = vmatprep.subr.bf16.mxu0 %v2197_v43 }
 0x144   : > { %1663 = vmatpush3.bf16.msra.mxu0 %v1863_v19 }
 0x145   : > { %1664 = vmatprep.subr.bf16.mxu0 %v2197_v43 }
 0x148   : > { %1665 = vmatpush3.bf16.msra.mxu0 %v1864_v20 }
 0x149   : > { %1666 = vmatprep.subr.bf16.mxu0 %v2197_v43 }
 0x14c   : > { %1667 = vmatpush3.bf16.msra.mxu0 %v1865_v56 }
 0x14d   : > { %1668 = vmatprep.subr.bf16.mxu0 %v2197_v43 }
 0x150   : > { %1669 = vmatpush3.bf16.msra.mxu0 %v1866_v57 }
 0x1e6   : > { %v1558_v21 = vpop.f32.mrb[0].mxu0 }
 0x1e7   : > { %v1559_v23 = vpop.f32.mrb[1].mxu0 }
 0x1e8   : > { %v1560_v24 = vadd.f32 %v1559_v23, %v1558_v21  ;;  %v1561_v25 = vpop.f32.mrb[2].mxu0  ;;  %v1580_v26 = vpop.f32.mrb[0].mxu1 }
 0x1e9   : > { %v1562_v27 = vpop.f32.mrb[3].mxu0  ;;  %v1581_v30 = vpop.f32.mrb[1].mxu1 }
 0x1ea   : > { %v881_v28 = vadd.f32 %v1560_v24, %v1457_v22  ;;  %v1563_v29 = vadd.f32 %v1562_v27, %v1561_v25  ;;  %v1582_v31 = vadd.f32 %v1581_v30, %v1580_v26  ;;  %v1583_v32 = vpop.f32.mrb[2].mxu1 }
 0x1eb   : > { %v1584_v34 = vpop.f32.mrb[3].mxu1 }
 0x1ec   : > { %v884_v33 = vadd.f32 %v1563_v29, %v1457_v22  ;;  %v922_v35 = vadd.f32 %v1582_v31, %v881_v28  ;;  %v1585_v36 = vadd.f32 %v1584_v34, %v1583_v32 }
 0x1ee   : > { %v925_v37 = vadd.f32 %v1585_v36, %v884_v33 }
 0x1f0   : > { %v1003_v38 = vpop.f32.mrb[4].mxu1 }
 0x1f1   : > { %v1632_v39 = vpop.f32.mrb[5].mxu1 }
 0x1f2   : > { %v1006_v40 = vpop.f32.mrb[6].mxu1 }
 0x1f3   : > { %v1633_v41 = vpop.f32.mrb[7].mxu1 }
 0x206   : > { %v1602_v42 = vpop.f32.mrb[4].mxu0 }
 0x207   : > { %v1603_v44 = vpop.f32.mrb[5].mxu0 }
 0x208   : > { %v1604_v45 = vadd.f32 %v1603_v44, %v1602_v42  ;;  %v1605_v46 = vpop.f32.mrb[6].mxu0 }
 0x209   : > { %v1606_v47 = vpop.f32.mrb[7].mxu0 }
 0x20a   : > { %v963_v48 = vadd.f32 %v1604_v45, %v922_v35  ;;  %v1607_v49 = vadd.f32 %v1606_v47, %v1605_v46 }
 0x20c   : > { %v1004_v50 = vadd.f32 %v1003_v38, %v963_v48  ;;  %v966_v51 = vadd.f32 %v1607_v49, %v925_v37 }
 0x20e   : > { %v1007_v52 = vadd.f32 %v1006_v40, %v966_v51  ;;  %v1010_v53 = vmax.f32 %v1004_v50, 0.0 }
 0x210   : > { %v1011_v54 = vmax.f32 %v1007_v52, 0.0 }
 0x212   : > { %v1012_v55 = vpack.c.bf16 %v1011_v54, %v1010_v53 }
 0x214   : > { %1651 = vmatmul.mubr.bf16.vlgmr.msra.gmra.mrb[8].mxu1 %v1012_v55 }
 0x2e7   : > { %v1118_v59 = vpop.f32.mrb[8].mxu1 }
 0x2e8   : > { %v1119_v60 = vadd.f32 %v1508_v58, %v1118_v59  ;;  %v1652_v61 = vpop.f32.mrb[9].mxu1 }
 0x2e9   : > { %v1121_v62 = vpop.f32.mrb[10].mxu1 }
 0x2ea   : > { %v1122_v63 = vadd.f32 %v1508_v58, %v1121_v62  ;;  %v1653_v0 = vpop.f32.mrb[11].mxu1  ;;  %v1125_v1 = vmax.f32 %v1119_v60, 0.0 }
 0x2ec   : > { %v1126_v2 = vmax.f32 %v1122_v63, 0.0 }
 0x2ee   : > { %v1127_v3 = vpack.c.bf16 %v1126_v2, %v1125_v1 }
 0x2f0   : > { %1671 = vmatmul.mubr.bf16.vlgmr.msra.gmra.mrb[8].mxu0 %v1127_v3 }
 0x3c3   : > { %v1233_v5 = vpop.f32.mrb[8].mxu0 }
 0x3c4   : > { %v1234_v6 = vadd.f32 %v1517_v4, %v1233_v5  ;;  %v1672_v7 = vpop.f32.mrb[9].mxu0 }
 0x3c5   : > { %v1236_v8 = vpop.f32.mrb[10].mxu0 }
 0x3c6   : > { %v1240_v43 = vmax.f32 %v1234_v6, 0.0  ;;  %v1237_v10 = vadd.f32 %v1517_v4, %v1236_v8  ;;  %v1673_v11 = vpop.f32.mrb[11].mxu0 }
 0x3c8   : > { %v1241_v12 = vmax.f32 %v1237_v10, 0.0  ;;  %v1249_v13 = vadd.f32 %v1526_v9, %v1240_v43 }
 0x3ca   : > { %1251 = vmax.xlane.f32.xlu0 %v1249_v13  ;;  %v1250_v14 = vadd.f32 %v1526_v9, %v1241_v12 }
 0x3ce   : > { %1253 = vmax.xlane.f32.xlu0 %v1250_v14 }
 0x457   : > { %v1252_v15 = vpop.xlane.xlu0 %1251 }
 0x458   : > { %v1255_v16 = vsub.f32 %v1249_v13, %v1252_v15 }
 0x45a   : > { %v1257_v17 = vmul.f32 1.442695, %v1255_v16 }
 0x45b   : > { %v1254_v18 = vpop.xlane.xlu0 %1253 }
 0x45c   : > { %v1256_v19 = vsub.f32 %v1250_v14, %v1254_v18  ;;  %1867 = vpow2.f32 %v1257_v17 }
 0x45e   : > { %v1259_v20 = vmul.f32 1.442695, %v1256_v19 }
 0x460   : > { %1869 = vpow2.f32 %v1259_v20 }
 0x466   : > { %v1868_v21 = vpop.eup %1867 }
 0x467   : > { %1261 = vadd.xlane.f32.xlu1 %v1868_v21 }
 0x46a   : > { %v1870_v22 = vpop.eup %1869 }
 0x46b   : > { %1263 = vadd.xlane.f32.xlu1 %v1870_v22 }
 0x4f4   : > { %v1262_v23 = vpop.xlane.xlu1 %1261 }
 0x4f5   : > { %1871 = vlog2.f32 %v1262_v23 }
 0x4f8   : > { %v1264_v24 = vpop.xlane.xlu1 %1263 }
 0x4f9   : > { %1873 = vlog2.f32 %v1264_v24 }
 0x4ff   : > { %v1872_v25 = vpop.eup %1871 }
 0x500   : > { %v1266_v26 = vmul.f32 0.6931472, %v1872_v25 }
 0x502   : > { %v1269_v29 = vsub.f32 %v1255_v16, %v1266_v26 }
 0x503   : > { %v1874_v27 = vpop.eup %1873 }
 0x504   : > { %v1268_v28 = vmul.f32 0.6931472, %v1874_v27 }
 0x506   : > { %v1270_v30 = vsub.f32 %v1256_v19, %v1268_v28 }
 0x508   : > { %v1540_v31 = vpack.c.bf16 %v1270_v30, %v1269_v29 }
 0x50a   : > { %1541 = vst [vmem:[%s418_s22] sm:$0xff] %v1540_v31  }
 0x50b   : > { %2114 = shalt.err (!%p2111_p10)
}
 0x50c   : > { %s2115_s25 = scalar_lea.hbm %s2591_s20, 128  ;;  %s2119_s12 = scalar_lea.hbm %s2645_s8, 256 }
 0x50d   : > { %p2116_p11 = scmp.ne.s32.totalorder %s2591_s20, %s2115_s25  ;;  %p2120_p9 = scmp.lt.u32.totalorder %s2591_s20, %s2645_s8 }
 0x50e   : > { %p2121_p7 = scmp.lt.u32.totalorder %s2119_s12, %s2115_s25  ;;  %p2123_p12 = scmp.lt.u32.totalorder %s2115_s25, %s2591_s20 }
 0x50f   : > { %p2117_p0 = pnand %p2116_p11, %p2670_p13 }
 0x510   : > { %p2122_p4 = por %p2121_p7, %p2120_p9 }
 0x511   : > { %p2118_p5 = pneg %p2117_p0 }
 0x512   : > { %p2124_p1 = por %p2123_p12, %p2122_p4 }
 0x514   : > { %p2125_p3 = pnand %p2124_p1, %p2118_p5 }
 0x516   : > { %2128 = shalt.err (!%p2125_p3)
}
 0x517   : > { %s2200_s21 = smov 64   ;;  %s2201_s23 = smov 4  }
 0x518   : > { %1707 = dma.vmem_to_hbm [thread:$0]  (%p2670_p13), %s2593_s13, 128, %s2591_s20, %s1282_s14, %s2200_s21, %s2200_s21, %s2201_s23  }
 0x519 PF: > { %s1310_s2 = sand.u32 1, %s2171_s27   ;;  %p2671_p2 = scmp.ne.s32.totalorder %s2659_s18, 0 }
 0x51a   : > { %p2672_p8 = scmp.ge.s32.totalorder %s2183_s30, 2  ;;  %s1311_s11 = scalar_lea.sflag [#allocation4], %s1310_s2 }
 0x51c   : > { %p1736_p6 = pnand %p2672_p8, %p2671_p2 }
 0x51e   : > { %2166 = dma.done.wait (!%p1736_p6), %s1311_s11, 128  }
 0x51f   : > { %2168 = vsyncadd (!%p1736_p6), %s1311_s11, 4294967168  ;;  %p25_p10 = scmp.ge.s32.totalorder %s2450_s15, 4   ;;  %s2673_s27 = smov %s2175_s28 }
 0x520   : > { %s2674_s28 = smov %s2179_s29  ;;  %s2675_s29 = smov %s2462_s17 }
 0x521   : > { %s2676_s30 = smov %s2450_s15  ;;  %27 = sbr.rel (!%p25_p10) target bundleno = 12 (0xc), region = 125 }
 0x528   :  { %1316 = vsyncpa [#allocation3], 1 }
 0x529   :  { %1318 = vsyncpa [#allocation3 + $0x1], 1 }
 0x52a   :  { %1319 = vsyncpa [#allocation6], 1 }
 0x52b   :  { %1320 = vsyncpa [#allocation9], 1 }
 0x52c   :  { %1321 = vsyncpa [#allocation12], 1 }
 0x52d   :  { %1322 = vsyncpa [#allocation15], 1 }
 0x52e   :  { %1323 = vsyncpa [#allocation4], 1 }
 0x52f   :  { %1325 = vsyncpa [#allocation4 + $0x1], 1 }

</bundles_post_ra>
